<compile_context>
chip_gen: v7x
topology: tpu7x:2x2x1
jax: 0.10.0
libtpu: 0.0.40
codegen_flags: <defaults>
</compile_context>

<pallas_src>
import jax
import jax.numpy as jnp
from jax.experimental import pallas as pl
from jax.experimental.pallas import tpu as pltpu

GATE_CH = 16      # gating conv output channels (fixed by the module)
EXPERT_CH = 8     # each expert's conv output channels (concrete expert choice)


def _round_up(n, m):
    return (n + m - 1) // m * m


def prep_params(params):
    """Fuse / transpose natural parameters into kernel layouts (done once)."""
    gwc, gbc = params["gwc"], params["gbc"]          # (9,16), (16,)
    gwl, gbl = params["gwl"], params["gbl"]          # (16,E), (E,)
    ewc, ebc = params["ewc"], params["ebc"]          # (E,9,8), (E,8)
    ewl, ebl = params["ewl"], params["ebl"]          # (E,8,N), (E,N)
    E = ewc.shape[0]
    N = ewl.shape[-1]
    # Fused conv weight: rows 0..15 = gating channels, row 16+e*8+c = expert e chan c.
    wc = jnp.concatenate(
        [gwc.T, jnp.transpose(ewc, (0, 2, 1)).reshape(E * EXPERT_CH, 9)], axis=0)
    bc = jnp.concatenate([gbc, ebc.reshape(E * EXPERT_CH)], axis=0)[:, None]
    rep = jnp.repeat(jnp.eye(E, dtype=jnp.float32), EXPERT_CH, axis=0)   # (E*8, E)
    wl = jnp.transpose(ewl, (2, 0, 1)).reshape(N, E * EXPERT_CH)         # (N, E*8)
    return dict(
        wc=wc.astype(jnp.bfloat16),       # bf16 into the MXU, f32 accumulate
        bc=bc.astype(jnp.float32),
        gwl=gwl.T.astype(jnp.float32),    # (E,16)
        gbl=gbl[:, None].astype(jnp.float32),
        rep=rep,
        wl=wl.astype(jnp.float32),
        ebl=ebl.T.astype(jnp.float32),    # (N,E)
    )


def mixture_of_experts(x, params):
    """x: (B, 1, H, W) f32 NCHW.  Returns (B, num_classes) f32."""
    B, C, H, W = x.shape
    assert C == 1, "gating conv expects a single input channel"
    E = params["ewc"].shape[0]
    N = params["ewl"].shape[-1]
    n_conv = GATE_CH + E * EXPERT_CH

    Hp, Wp = H + 2, W + 2                   # zero-padded image (padding=1)
    qw = H * Wp                             # conv outputs indexed q = h*Wp + w
    tapw = _round_up(qw, 128)               # lane-dense tap width
    offsets = [di * Wp + dj for di in range(3) for dj in range(3)]
    L = _round_up(offsets[-1] + tapw, 128)  # flattened padded length

    # --- wrapper-side data movement (pad + flatten: ~1.5x input, not 9x) ---
    xp = jnp.pad(x[:, 0], ((0, 0), (1, 1), (1, 1)))                    # (B,Hp,Wp)
    xpf = jnp.pad(xp.reshape(B, Hp * Wp), ((0, 0), (0, L - Hp * Wp)))
    xpf = xpf[:, None, :]                                              # (B,1,L)

    # Pooling mask over the q axis: 1/(H*W) at the H*W valid conv outputs,
    # 0 at Wp-stride junk columns / tail padding.  Folds the GAP mean.
    q = jnp.arange(tapw)
    valid = (q < qw) & ((q % Wp) < W)
    pmask = (valid.astype(jnp.float32) / float(H * W))[None, :]        # (1,tapw)

    p = prep_params(params)

    def kernel(xpf_ref, pmask_ref, wc_ref, bc_ref, gwl_ref, gbl_ref,
               rep_ref, wl_ref, ebl_ref, out_ref):
        xrow = xpf_ref[0]                                    # (1, L) f32
        # 9 conv taps = constant-offset lane slices of the flat padded image.
        taps = [xrow[:, o:o + tapw] for o in offsets]        # 9 x (1, tapw)
        patches = jnp.concatenate(taps, axis=0)              # (9, tapw)
        # One fused conv matmul for gating + all experts (bf16 in, f32 acc).
        feats = jnp.dot(wc_ref[...], patches.astype(jnp.bfloat16),
                        preferred_element_type=jnp.float32)  # (n_conv, tapw)
        feats = jnp.maximum(feats + bc_ref[...], 0.0)
        # Global average pool = masked lane reduce (mean folded into the mask).
        pooled = jnp.sum(feats * pmask_ref[...], axis=-1, keepdims=True)  # (n_conv,1)

        gp = pooled[:GATE_CH, :]                             # (16,1)  gating feats
        ep = pooled[GATE_CH:, :]                             # (E*8,1) expert feats

        # Gating linear + softmax (f32; denominator reciprocal on the EUP).
        logits = jnp.dot(gwl_ref[...], gp,
                         preferred_element_type=jnp.float32) + gbl_ref[...]  # (E,1)
        logits = logits - jnp.max(logits, axis=0, keepdims=True)
        ge = jnp.exp(logits)
        gate = ge * pl.reciprocal(jnp.sum(ge, axis=0, keepdims=True), approx=True)

        # Collapsed expert epilogue: fold the gate into the pooled expert
        # features via a one-hot repeat matmul, then one stacked linear.
        gate_rep = jnp.dot(rep_ref[...], gate, preferred_element_type=jnp.float32)
        mixed = (jnp.dot(wl_ref[...], gate_rep * ep,
                         preferred_element_type=jnp.float32)
                 + jnp.dot(ebl_ref[...], gate, preferred_element_type=jnp.float32))
        out_ref[0] = mixed                                   # (N,1)

    # TODO(synk): for large H*W, add a second ("arbitrary", last) grid axis over
    # spatial blocks with a VMEM pooled-feature accumulator (pl.when init /
    # finalize) so VMEM stays bounded on v7x; at 16x16 one sample fits trivially.
    grid_spec = pltpu.PrefetchScalarGridSpec(
        num_scalar_prefetch=0,
        grid=(B,),
        in_specs=[
            pl.BlockSpec((1, 1, L), lambda b: (b, 0, 0)),        # per-sample image
            pl.BlockSpec((1, tapw), lambda b: (0, 0)),           # pooling mask
            pl.BlockSpec((n_conv, 9), lambda b: (0, 0)),         # fused conv W (bf16)
            pl.BlockSpec((n_conv, 1), lambda b: (0, 0)),         # fused conv bias
            pl.BlockSpec((E, GATE_CH), lambda b: (0, 0)),        # gating linear W^T
            pl.BlockSpec((E, 1), lambda b: (0, 0)),              # gating linear bias
            pl.BlockSpec((E * EXPERT_CH, E), lambda b: (0, 0)),  # one-hot repeat
            pl.BlockSpec((N, E * EXPERT_CH), lambda b: (0, 0)),  # stacked expert W^T
            pl.BlockSpec((N, E), lambda b: (0, 0)),              # stacked expert b^T
        ],
        out_specs=pl.BlockSpec((1, N, 1), lambda b: (b, 0, 0)),
    )
    out = pl.pallas_call(
        kernel,
        out_shape=jax.ShapeDtypeStruct((B, N, 1), jnp.float32),
        grid_spec=grid_spec,
        compiler_params=pltpu.CompilerParams(
            dimension_semantics=("parallel",)),    # v7x: 2 TCs split the batch
    )(xpf, pmask, p["wc"], p["bc"], p["gwl"], p["gbl"], p["rep"], p["wl"], p["ebl"])
    return out[:, :, 0]


def init_params(key, num_experts=4, num_classes=2):
    """Deterministic synthetic parameters (shapes match the PyTorch module)."""
    ks = jax.random.split(key, 8)
    s = 0.1
    f32 = jnp.float32
    E, N = num_experts, num_classes
    return dict(
        gwc=s * jax.random.normal(ks[0], (9, GATE_CH), f32),        # Conv2d(1,16,3)
        gbc=s * jax.random.normal(ks[1], (GATE_CH,), f32),
        gwl=s * jax.random.normal(ks[2], (GATE_CH, E), f32),        # Linear(16,E)
        gbl=s * jax.random.normal(ks[3], (E,), f32),
        ewc=s * jax.random.normal(ks[4], (E, 9, EXPERT_CH), f32),   # expert Conv2d(1,8,3)
        ebc=s * jax.random.normal(ks[5], (E, EXPERT_CH), f32),
        ewl=s * jax.random.normal(ks[6], (E, EXPERT_CH, N), f32),   # expert Linear(8,N)
        ebl=s * jax.random.normal(ks[7], (E, N), f32),
    )


def reference(x, params):
    """Pure-JAX f32 reference matching the PyTorch forward semantics."""
    B, _, H, W = x.shape
    xp = jnp.pad(x[:, 0], ((0, 0), (1, 1), (1, 1)))
    patches = jnp.stack([xp[:, di:di + H, dj:dj + W].reshape(B, H * W)
                         for di in range(3) for dj in range(3)], axis=-1)   # (B,P,9)
    gf = jnp.maximum(jnp.einsum("bpk,kc->bpc", patches, params["gwc"]) + params["gbc"], 0.0)
    gate = jax.nn.softmax(jnp.mean(gf, axis=1) @ params["gwl"] + params["gbl"], axis=-1)
    outs = []
    for e in range(params["ewc"].shape[0]):
        ef = jnp.maximum(jnp.einsum("bpk,kc->bpc", patches, params["ewc"][e])
                         + params["ebc"][e], 0.0)
        outs.append(jnp.mean(ef, axis=1) @ params["ewl"][e] + params["ebl"][e])
    eo = jnp.stack(outs, axis=1)                        # (B,E,N)
    return jnp.sum(gate[:, :, None] * eo, axis=1)       # (B,N)


if __name__ == "__main__":
    key = jax.random.PRNGKey(0)
    kx, kp = jax.random.split(key)
    # Small shapes consistent with the module: Conv2d(1, 16, ...) => 1 input channel.
    x = jax.random.normal(kx, (2, 1, 16, 16), jnp.float32)   # NCHW, like PyTorch
    params = init_params(kp, num_experts=4, num_classes=2)

    out = jax.block_until_ready(jax.jit(mixture_of_experts)(x, params))
    ref = reference(x, params)

    assert out.shape == (2, 2), out.shape
    # bf16 at the MXU + approx softmax reciprocal => slightly looser tolerance.
    assert jnp.allclose(out, ref, atol=5e-3, rtol=5e-3), (out, ref)
    print("KERNEL_OK")
</pallas_src>

<mosaic_0001>
module attributes {stable_mosaic.version = 11 : i64} {
  func.func @kernel(%arg0: i32, %arg1: memref<1x1x512xf32, #tpu.memory_space<vmem>>, %arg2: memref<1x384xf32, #tpu.memory_space<vmem>>, %arg3: memref<48x9xbf16, #tpu.memory_space<vmem>>, %arg4: memref<48x1xf32, #tpu.memory_space<vmem>>, %arg5: memref<4x16xf32, #tpu.memory_space<vmem>>, %arg6: memref<4x1xf32, #tpu.memory_space<vmem>>, %arg7: memref<32x4xf32, #tpu.memory_space<vmem>>, %arg8: memref<2x32xf32, #tpu.memory_space<vmem>>, %arg9: memref<2x4xf32, #tpu.memory_space<vmem>>, %arg10: memref<1x2x1xf32, #tpu.memory_space<vmem>>) attributes {dimension_semantics = [#tpu.dimension_semantics<parallel>], iteration_bounds = array<i64: 2>, scalar_prefetch = 0 : i64, scratch_operands = 0 : i64, tpu.core_type = #tpu.core_type<tc>, window_params = [{transform_indices = @transform_0, window_bounds = array<i64: 1, 1, 512>}, {pipeline_mode = #tpu.pipeline_mode<synchronous>, transform_indices = @transform_1, window_bounds = array<i64: 1, 384>}, {pipeline_mode = #tpu.pipeline_mode<synchronous>, transform_indices = @transform_2, window_bounds = array<i64: 48, 9>}, {pipeline_mode = #tpu.pipeline_mode<synchronous>, transform_indices = @transform_3, window_bounds = array<i64: 48, 1>}, {pipeline_mode = #tpu.pipeline_mode<synchronous>, transform_indices = @transform_4, window_bounds = array<i64: 4, 16>}, {pipeline_mode = #tpu.pipeline_mode<synchronous>, transform_indices = @transform_5, window_bounds = array<i64: 4, 1>}, {pipeline_mode = #tpu.pipeline_mode<synchronous>, transform_indices = @transform_6, window_bounds = array<i64: 32, 4>}, {pipeline_mode = #tpu.pipeline_mode<synchronous>, transform_indices = @transform_7, window_bounds = array<i64: 2, 32>}, {pipeline_mode = #tpu.pipeline_mode<synchronous>, transform_indices = @transform_8, window_bounds = array<i64: 2, 4>}, {transform_indices = @transform_9, window_bounds = array<i64: 1, 2, 1>}]} {
    %c0 = arith.constant 0 : index
    %c0_0 = arith.constant 0 : index
    %c0_1 = arith.constant 0 : index
    %0 = vector.load %arg1[%c0, %c0_0, %c0_1] : memref<1x1x512xf32, #tpu.memory_space<vmem>>, vector<1x1x512xf32>
    %1 = vector.shape_cast %0 : vector<1x1x512xf32> to vector<1x512xf32>
    %2 = vector.extract_strided_slice %1 {offsets = [0, 0], sizes = [1, 384], strides = [1, 1]} : vector<1x512xf32> to vector<1x384xf32>
    %3 = vector.extract_strided_slice %1 {offsets = [0, 1], sizes = [1, 384], strides = [1, 1]} : vector<1x512xf32> to vector<1x384xf32>
    %4 = vector.extract_strided_slice %1 {offsets = [0, 2], sizes = [1, 384], strides = [1, 1]} : vector<1x512xf32> to vector<1x384xf32>
    %5 = vector.extract_strided_slice %1 {offsets = [0, 18], sizes = [1, 384], strides = [1, 1]} : vector<1x512xf32> to vector<1x384xf32>
    %6 = vector.extract_strided_slice %1 {offsets = [0, 19], sizes = [1, 384], strides = [1, 1]} : vector<1x512xf32> to vector<1x384xf32>
    %7 = vector.extract_strided_slice %1 {offsets = [0, 20], sizes = [1, 384], strides = [1, 1]} : vector<1x512xf32> to vector<1x384xf32>
    %8 = vector.extract_strided_slice %1 {offsets = [0, 36], sizes = [1, 384], strides = [1, 1]} : vector<1x512xf32> to vector<1x384xf32>
    %9 = vector.extract_strided_slice %1 {offsets = [0, 37], sizes = [1, 384], strides = [1, 1]} : vector<1x512xf32> to vector<1x384xf32>
    %10 = vector.extract_strided_slice %1 {offsets = [0, 38], sizes = [1, 384], strides = [1, 1]} : vector<1x512xf32> to vector<1x384xf32>
    %11 = tpu.concatenate %2, %3, %4, %5, %6, %7, %8, %9, %10 in 0 : vector<1x384xf32>, vector<1x384xf32>, vector<1x384xf32>, vector<1x384xf32>, vector<1x384xf32>, vector<1x384xf32>, vector<1x384xf32>, vector<1x384xf32>, vector<1x384xf32> -> vector<9x384xf32>
    %c0_2 = arith.constant 0 : index
    %c0_3 = arith.constant 0 : index
    %12 = vector.load %arg3[%c0_2, %c0_3] : memref<48x9xbf16, #tpu.memory_space<vmem>>, vector<48x9xbf16>
    %13 = arith.truncf %11 : vector<9x384xf32> to vector<9x384xbf16>
    %cst = arith.constant dense<0.000000e+00> : vector<48x384xf32>
    %14 = tpu.matmul %12, %13, %cst {dimension_numbers = #tpu.dot_dimension_numbers<[1], [0], [0], [1], [0, 0, 1, 1], [], []>} : vector<48x9xbf16>, vector<9x384xbf16>, vector<48x384xf32> -> vector<48x384xf32>
    %c0_4 = arith.constant 0 : index
    %c0_5 = arith.constant 0 : index
    %15 = vector.load %arg4[%c0_4, %c0_5] : memref<48x1xf32, #tpu.memory_space<vmem>>, vector<48x1xf32>
    %16 = vector.broadcast %15 : vector<48x1xf32> to vector<48x384xf32>
    %17 = arith.addf %14, %16 : vector<48x384xf32>
    %cst_6 = arith.constant 0.000000e+00 : f32
    %18 = vector.broadcast %cst_6 : f32 to vector<48x384xf32>
    %19 = arith.maximumf %17, %18 : vector<48x384xf32>
    %c0_7 = arith.constant 0 : index
    %c0_8 = arith.constant 0 : index
    %20 = vector.load %arg2[%c0_7, %c0_8] : memref<1x384xf32, #tpu.memory_space<vmem>>, vector<1x384xf32>
    %21 = vector.broadcast %20 : vector<1x384xf32> to vector<48x384xf32>
    %22 = arith.mulf %19, %21 : vector<48x384xf32>
    %cst_9 = arith.constant dense<0.000000e+00> : vector<48xf32>
    %23 = vector.multi_reduction <add>, %22, %cst_9 [1] : vector<48x384xf32> to vector<48xf32>
    %24 = vector.shape_cast %23 : vector<48xf32> to vector<48x1xf32>
    %25 = vector.extract_strided_slice %24 {offsets = [0, 0], sizes = [16, 1], strides = [1, 1]} : vector<48x1xf32> to vector<16x1xf32>
    %26 = vector.extract_strided_slice %24 {offsets = [16, 0], sizes = [32, 1], strides = [1, 1]} : vector<48x1xf32> to vector<32x1xf32>
    %c0_10 = arith.constant 0 : index
    %c0_11 = arith.constant 0 : index
    %27 = vector.load %arg5[%c0_10, %c0_11] : memref<4x16xf32, #tpu.memory_space<vmem>>, vector<4x16xf32>
    %cst_12 = arith.constant dense<0.000000e+00> : vector<4x1xf32>
    %28 = tpu.matmul %27, %25, %cst_12 {dimension_numbers = #tpu.dot_dimension_numbers<[1], [0], [0], [1], [0, 0, 1, 1], [], []>} : vector<4x16xf32>, vector<16x1xf32>, vector<4x1xf32> -> vector<4x1xf32>
    %c0_13 = arith.constant 0 : index
    %c0_14 = arith.constant 0 : index
    %29 = vector.load %arg6[%c0_13, %c0_14] : memref<4x1xf32, #tpu.memory_space<vmem>>, vector<4x1xf32>
    %30 = arith.addf %28, %29 : vector<4x1xf32>
    %cst_15 = arith.constant dense<0xFF800000> : vector<1xf32>
    %31 = vector.multi_reduction <maximumf>, %30, %cst_15 [0] : vector<4x1xf32> to vector<1xf32>
    %32 = vector.shape_cast %31 : vector<1xf32> to vector<1x1xf32>
    %33 = vector.broadcast %32 : vector<1x1xf32> to vector<4x1xf32>
    %34 = arith.subf %30, %33 : vector<4x1xf32>
    %35 = math.exp %34 : vector<4x1xf32>
    %cst_16 = arith.constant dense<0.000000e+00> : vector<1xf32>
    %36 = vector.multi_reduction <add>, %35, %cst_16 [0] : vector<4x1xf32> to vector<1xf32>
    %37 = vector.shape_cast %36 : vector<1xf32> to vector<1x1xf32>
    %38 = tpu.reciprocal %37 {approx = true} : vector<1x1xf32> -> vector<1x1xf32>
    %39 = vector.broadcast %38 : vector<1x1xf32> to vector<4x1xf32>
    %40 = arith.mulf %35, %39 : vector<4x1xf32>
    %c0_17 = arith.constant 0 : index
    %c0_18 = arith.constant 0 : index
    %41 = vector.load %arg7[%c0_17, %c0_18] : memref<32x4xf32, #tpu.memory_space<vmem>>, vector<32x4xf32>
    %cst_19 = arith.constant dense<0.000000e+00> : vector<32x1xf32>
    %42 = tpu.matmul %41, %40, %cst_19 {dimension_numbers = #tpu.dot_dimension_numbers<[1], [0], [0], [1], [0, 0, 1, 1], [], []>} : vector<32x4xf32>, vector<4x1xf32>, vector<32x1xf32> -> vector<32x1xf32>
    %c0_20 = arith.constant 0 : index
    %c0_21 = arith.constant 0 : index
    %43 = vector.load %arg8[%c0_20, %c0_21] : memref<2x32xf32, #tpu.memory_space<vmem>>, vector<2x32xf32>
    %44 = arith.mulf %42, %26 : vector<32x1xf32>
    %cst_22 = arith.constant dense<0.000000e+00> : vector<2x1xf32>
    %45 = tpu.matmul %43, %44, %cst_22 {dimension_numbers = #tpu.dot_dimension_numbers<[1], [0], [0], [1], [0, 0, 1, 1], [], []>} : vector<2x32xf32>, vector<32x1xf32>, vector<2x1xf32> -> vector<2x1xf32>
    %c0_23 = arith.constant 0 : index
    %c0_24 = arith.constant 0 : index
    %46 = vector.load %arg9[%c0_23, %c0_24] : memref<2x4xf32, #tpu.memory_space<vmem>>, vector<2x4xf32>
    %cst_25 = arith.constant dense<0.000000e+00> : vector<2x1xf32>
    %47 = tpu.matmul %46, %40, %cst_25 {dimension_numbers = #tpu.dot_dimension_numbers<[1], [0], [0], [1], [0, 0, 1, 1], [], []>} : vector<2x4xf32>, vector<4x1xf32>, vector<2x1xf32> -> vector<2x1xf32>
    %48 = arith.addf %45, %47 : vector<2x1xf32>
    %c0_26 = arith.constant 0 : index
    %c0_27 = arith.constant 0 : index
    %c0_28 = arith.constant 0 : index
    %49 = vector.load %arg10[%c0_26, %c0_27, %c0_28] : memref<1x2x1xf32, #tpu.memory_space<vmem>>, vector<1x2x1xf32>
    %50 = vector.shape_cast %49 : vector<1x2x1xf32> to vector<2x1xf32>
    %51 = vector.shape_cast %48 : vector<2x1xf32> to vector<1x2x1xf32>
    tpu.vector_store %arg10[%c0_26, %c0_27, %c0_28], %51 {strides = array<i32>} : memref<1x2x1xf32, #tpu.memory_space<vmem>>, vector<1x2x1xf32>,
    return
  }
  func.func @transform_0(%arg0: i32) -> (i32, i32, i32) {
    %c0_i32 = arith.constant 0 : i32
    %c0_i32_0 = arith.constant 0 : i32
    %c0_i32_1 = arith.constant 0 : i32
    return %arg0, %c0_i32, %c0_i32_0 : i32, i32, i32
  }
  func.func @transform_1(%arg0: i32) -> (i32, i32) {
    %c0_i32 = arith.constant 0 : i32
    %c0_i32_0 = arith.constant 0 : i32
    %c0_i32_1 = arith.constant 0 : i32
    return %c0_i32, %c0_i32_0 : i32, i32
  }
  func.func @transform_2(%arg0: i32) -> (i32, i32) {
    %c0_i32 = arith.constant 0 : i32
    %c0_i32_0 = arith.constant 0 : i32
    %c0_i32_1 = arith.constant 0 : i32
    return %c0_i32, %c0_i32_0 : i32, i32
  }
  func.func @transform_3(%arg0: i32) -> (i32, i32) {
    %c0_i32 = arith.constant 0 : i32
    %c0_i32_0 = arith.constant 0 : i32
    %c0_i32_1 = arith.constant 0 : i32
    return %c0_i32, %c0_i32_0 : i32, i32
  }
  func.func @transform_4(%arg0: i32) -> (i32, i32) {
    %c0_i32 = arith.constant 0 : i32
    %c0_i32_0 = arith.constant 0 : i32
    %c0_i32_1 = arith.constant 0 : i32
    return %c0_i32, %c0_i32_0 : i32, i32
  }
  func.func @transform_5(%arg0: i32) -> (i32, i32) {
    %c0_i32 = arith.constant 0 : i32
    %c0_i32_0 = arith.constant 0 : i32
    %c0_i32_1 = arith.constant 0 : i32
    return %c0_i32, %c0_i32_0 : i32, i32
  }
  func.func @transform_6(%arg0: i32) -> (i32, i32) {
    %c0_i32 = arith.constant 0 : i32
    %c0_i32_0 = arith.constant 0 : i32
    %c0_i32_1 = arith.constant 0 : i32
    return %c0_i32, %c0_i32_0 : i32, i32
  }
  func.func @transform_7(%arg0: i32) -> (i32, i32) {
    %c0_i32 = arith.constant 0 : i32
    %c0_i32_0 = arith.constant 0 : i32
    %c0_i32_1 = arith.constant 0 : i32
    return %c0_i32, %c0_i32_0 : i32, i32
  }
  func.func @transform_8(%arg0: i32) -> (i32, i32) {
    %c0_i32 = arith.constant 0 : i32
    %c0_i32_0 = arith.constant 0 : i32
    %c0_i32_1 = arith.constant 0 : i32
    return %c0_i32, %c0_i32_0 : i32, i32
  }
  func.func @transform_9(%arg0: i32) -> (i32, i32, i32) {
    %c0_i32 = arith.constant 0 : i32
    %c0_i32_0 = arith.constant 0 : i32
    %c0_i32_1 = arith.constant 0 : i32
    return %arg0, %c0_i32, %c0_i32_0 : i32, i32, i32
  }
}

</mosaic_0001>

<bundles_post_ra>
// kernel: mixture_of_experts.1
= control target key start
LH: loop header
LB: loop body
LE: loop exit
PB: predicated region body
PF: predicated region fallthrough
CT: control target
= control target key end

     0   :  { %s1458_s30 = smov 0   ;;  %s1679_s0 = inlined_call_operand.vmem [shape: f32[2,1,512], index: 0, kind: input, shape index: {}]   ;;  %s1680_s1 = inlined_call_operand.vmem [shape: f32[1,384], index: 1, kind: input, shape index: {}]   ;;  %s1681_s2 = inlined_call_operand.vmem [shape: bf16[48,9], index: 2, kind: input, shape index: {}]   ;;  %s1682_s3 = inlined_call_operand.vmem [shape: f32[48,1], index: 3, kind: input, shape index: {}]   ;;  %s1683_s4 = inlined_call_operand.vmem [shape: f32[4,16], index: 4, kind: input, shape index: {}]   ;;  %s1684_s5 = inlined_call_operand.vmem [shape: f32[4,1], index: 5, kind: input, shape index: {}]   ;;  %s1685_s6 = inlined_call_operand.vmem [shape: f32[32,4], index: 6, kind: input, shape index: {}]   ;;  %s1686_s7 = inlined_call_operand.vmem [shape: f32[2,32], index: 7, kind: input, shape index: {}]   ;;  %s1687_s8 = inlined_call_operand.vmem [shape: f32[2,4], index: 8, kind: input, shape index: {}]   ;;  %s1688_s9 = inlined_call_operand.vmem [shape: f32[2,2,1], index: 9, kind: output, shape index: {}]  }
   0x1 LB: > { %s1185_s10 = sadd.s32 4294967295, %s1393_s30   ;;  %p1189_p0 = scmp.ge.s32.totalorder %s1393_s30, 1  ;;  %s1393_s30 = sphi %s1458_s30, %s19_s30  }
   0x2   : > { %p286_p1 = scmp.lt.s32.totalorder %s1393_s30, 3 }
   0x4   : > { %p287_p2 = pnand %p1189_p0, %p286_p1 }
   0x5   : > { %p320_p3 = scmp.lt.s32.totalorder (!%p287_p2), %s1185_s10, 1  ;;  %v331_v0 = vlaneseq (!%p287_p2)  ;;  %s1395_s15 = smov (!%p287_p2), 126   ;;  %v1402_v13 = vmov (!%p287_p2), 0.0   ;;  %v1403_v14 = vmov (!%p287_p2), 0   ;;  %vm1404_vm0 = vmmov (!%p287_p2), 0   ;;  %v507_v15 = vld [vmem:[%s1682_s3] sm:$0xff] (!%p287_p2) }
   0x6   : > { %290 = sbr.rel (%p287_p2) target bundleno = 1254 (0x4e6), region = 56  ;;  %s1396_s16 = smov (!%p287_p2), 127   ;;  %1231 = vmatprep.subr.bf16.mxu1 (!%p287_p2), %v1402_v13  ;;  %611 = vmatprep.mubr.bf16.mxu0 (!%p287_p2), %v1403_v14  ;;  %v508_v16 = vld [vmem:[%s1682_s3 + $0x8] sm:$0xff] (!%p287_p2)  ;;  %vm358_vm1 = vcmask (!%p287_p2), 1039360   ;;  %vm373_vm2 = vcmask (!%p287_p2), 1031168   ;;  %vm470_vm3 = vcmask (!%p287_p2), 1040384  }
   0x7   : > { %v1468_v1 = vshrl.u32 (!%p287_p2), %v331_v0, 7  ;;  %s1397_s17 = smov (!%p287_p2), 110   ;;  %s1398_s18 = smov (!%p287_p2), 109   ;;  %1378 = vset.pattern.permute.xlu0 (!%p287_p2), %v1403_v14  ;;  %1379 = vset.pattern.permute.xlu1 (!%p287_p2), %v1403_v14  ;;  %vm474_vm4 = vcmask (!%p287_p2), 1041408   ;;  %vm388_vm5 = vcmask (!%p287_p2), 900096   ;;  %vm478_vm6 = vcmask (!%p287_p2), 1042432  }
   0x8   : > { %s1399_s19 = smov (!%p287_p2), 108   ;;  %s1400_s20 = smov (!%p287_p2), 92   ;;  %1233 = vmatprep.mubr.msk.bf16.mxu1 (!%p287_p2), %vm1404_vm0, %v1402_v13  ;;  %vm482_vm7 = vcmask (!%p287_p2), 1043456   ;;  %vm403_vm8 = vcmask (!%p287_p2), 891904   ;;  %vm418_vm9 = vcmask (!%p287_p2), 883712   ;;  %v1406_v34 = vmov (!%p287_p2), 65535  }
   0x9   : > { %v337_v2 = vsub.s32 (!%p287_p2), 1, %v1468_v1  ;;  %v341_v3 = vsub.s32 (!%p287_p2), 2, %v1468_v1  ;;  %v333_v4 = vsub.s32 (!%p287_p2), 0, %v1468_v1  ;;  %v348_v5 = vsub.s32 (!%p287_p2), 3, %v1468_v1  ;;  %s1401_s21 = smov (!%p287_p2), 91   ;;  %s1405_s22 = smov (!%p287_p2), 90  }
   0xa   : > { %v568_v35 = vsel (!%p287_p2), %vm482_vm7, 4294967295, %v1406_v34  ;;  %vm433_vm10 = vcmask (!%p287_p2), 752640   ;;  %vm486_vm11 = vcmask (!%p287_p2), 1044480   ;;  %vm448_vm12 = vcmask (!%p287_p2), 744448  }
   0xb   : > { %vm490_vm13 = vcmask (!%p287_p2), 1045504   ;;  %v1523_v49 = vsel (!%p287_p2), %vm486_vm11, %v568_v35, 0  ;;  %vm463_vm14 = vcmask (!%p287_p2), 736256   ;;  %vm494_vm15 = vcmask (!%p287_p2), 1046528  }
   0xd   : > { %s1690_s10 = smov (!%p320_p3, %s1185_s10), 1 }
   0xe   : > { %s1190_s11 = sshll.u32 %s1690_s10, 2 }
   0xf   : > { %s323_s14 = scalar_lea.vmem %s1679_s0, %s1190_s11 }
  0x10   : > { %v329_v6 = vld [vmem:[%s323_s14] sm:$0xf] }
  0x11   : > { %v1480_v7 = vrot.slane %v329_v6, %v337_v2  ;;  %v1484_v8 = vrot.slane %v329_v6, %v341_v3  ;;  %v1488_v9 = vrot.slane %v329_v6, %v333_v4  ;;  %v349_v10 = vrot.slane %v329_v6, %v348_v5 }
  0x13   : > { %v1318_v11 = vpack.i.bf16 %v1484_v8, %v1480_v7  ;;  %v1323_v12 = vpack.i.bf16 %v349_v10, %v1488_v9 }
  0x15   : > { %1319 = vrot.lane.b32.xlu1 %v1318_v11, %s1395_s15  ;;  %1309 = vrot.lane.b32.xlu0 %v1318_v11, %s1396_s16 }
  0x19   : > { %1324 = vrot.lane.b32.xlu1 %v1323_v12, %s1395_s15  ;;  %1314 = vrot.lane.b32.xlu0 %v1323_v12, %s1396_s16 }
  0x1d   : > { %1334 = vrot.lane.b32.xlu1 %v1323_v12, %s1397_s17  ;;  %1329 = vrot.lane.b32.xlu0 %v1318_v11, %s1397_s17 }
  0x21   : > { %1344 = vrot.lane.b32.xlu1 %v1323_v12, %s1398_s18  ;;  %1339 = vrot.lane.b32.xlu0 %v1318_v11, %s1398_s18 }
  0x25   : > { %1354 = vrot.lane.b32.xlu1 %v1323_v12, %s1399_s19  ;;  %1349 = vrot.lane.b32.xlu0 %v1318_v11, %s1399_s19 }
  0x29   : > { %1364 = vrot.lane.b32.xlu1 %v1323_v12, %s1400_s20  ;;  %1359 = vrot.lane.b32.xlu0 %v1318_v11, %s1400_s20 }
  0x2d   : > { %440 = vrot.lane.b32.xlu1 %v1488_v9, %s1401_s21  ;;  %1369 = vrot.lane.b32.xlu0 %v1318_v11, %s1401_s21 }
  0x31   : > { %455 = vrot.lane.b32.xlu1 %v1488_v9, %s1405_s22  ;;  %1374 = vrot.lane.b32.xlu0 %v1318_v11, %s1405_s22 }
  0x35   : > { %461 = vrot.lane.b32.xlu1 %v349_v10, %s1405_s22  ;;  %446 = vrot.lane.b32.xlu0 %v349_v10, %s1401_s21  ;;  %s1191_s21 = sshll.u32 %s1690_s10, 1 }
  0x36   : > { %s327_s24 = scalar_lea.vmem %s1688_s9, %s1191_s21 }
  0x39   : > { %515 = vperm.xlu0 %1378, %v507_v15   ;;  %520 = vperm.xlu1 %1379, %v508_v16  }
  0x87   : > { %v1320_v17 = vpop.permute.xlu1 %1319  ;;  %v1310_v18 = vpop.permute.xlu0 %1309 }
  0x88   : > { %v1312_v23 = vunpack.i.h.bf16 %v1310_v18  ;;  %v1311_v24 = vunpack.i.l.bf16 %v1310_v18  ;;  %v1322_v26 = vunpack.i.h.bf16 %v1320_v17  ;;  %v1321_v27 = vunpack.i.l.bf16 %v1320_v17 }
  0x8a   : > { %v360_v31 = vsel %vm358_vm1, %v1311_v24, %v1312_v23  ;;  %v375_v36 = vsel %vm373_vm2, %v1321_v27, %v1322_v26 }
  0x8b   : > { %v1325_v19 = vpop.permute.xlu1 %1324  ;;  %v1315_v20 = vpop.permute.xlu0 %1314  ;;  %v472_v37 = vsel %vm470_vm3, %v1480_v7, %v360_v31 }
  0x8c   : > { %v1316_v25 = vunpack.i.l.bf16 %v1315_v20  ;;  %v1317_v28 = vunpack.i.h.bf16 %v1315_v20  ;;  %v1326_v32 = vunpack.i.l.bf16 %v1325_v19  ;;  %v1327_v38 = vunpack.i.h.bf16 %v1325_v19 }
  0x8d   : > { %v476_v48 = vsel %vm474_vm4, %v472_v37, %v375_v36 }
  0x8e   : > { %v359_v33 = vsel %vm358_vm1, %v1316_v25, %v1311_v24  ;;  %v361_v39 = vsel %vm358_vm1, %v1312_v23, %v1317_v28  ;;  %v374_v46 = vsel %vm373_vm2, %v1326_v32, %v1321_v27  ;;  %v376_v50 = vsel %vm373_vm2, %v1322_v26, %v1327_v38 }
  0x8f   : > { %v1335_v21 = vpop.permute.xlu1 %1334  ;;  %v1330_v22 = vpop.permute.xlu0 %1329  ;;  %v471_v47 = vsel %vm470_vm3, %v1488_v9, %v359_v33  ;;  %v473_v51 = vsel %vm470_vm3, %v1484_v8, %v361_v39  ;;  %vm558_vm1 = vcmask 72704   ;;  %vm778_vm2 = vcmask 130048  }
  0x90   : > { %v1337_v42 = vunpack.i.h.bf16 %v1335_v21  ;;  %v1336_v43 = vunpack.i.l.bf16 %v1335_v21  ;;  %v1332_v44 = vunpack.i.h.bf16 %v1330_v22  ;;  %v1331_v45 = vunpack.i.l.bf16 %v1330_v22 }
  0x91   : > { %v475_v58 = vsel %vm474_vm4, %v471_v47, %v374_v46  ;;  %v477_v8 = vsel %vm474_vm4, %v473_v51, %v376_v50  ;;  %vm876_vm3 = vcmask 31744   ;;  %vm852_vm4 = vcmask 3072  }
  0x92   : > { %v391_v56 = vsel %vm388_vm5, %v1332_v44, %v1337_v42  ;;  %v389_v57 = vsel %vm388_vm5, %v1336_v43, %v1331_v45  ;;  %v390_v60 = vsel %vm388_vm5, %v1331_v45, %v1332_v44  ;;  %vm1130_vm5 = vcmask 1024  }
  0x93   : > { %v1507_v29 = vpop.permute.xlu1 %1344  ;;  %v1509_v30 = vpop.permute.xlu0 %1339  ;;  %v479_v9 = vsel %vm478_vm6, %v475_v58, %v389_v57  ;;  %v480_v16 = vsel %vm478_vm6, %v476_v48, %v390_v60  ;;  %v481_v20 = vsel %vm478_vm6, %v477_v8, %v391_v56 }
  0x94   : > { %v1346_v52 = vunpack.i.l.bf16 %v1507_v29  ;;  %v1341_v53 = vunpack.i.l.bf16 %v1509_v30  ;;  %v1342_v59 = vunpack.i.h.bf16 %v1509_v30  ;;  %v1347_v0 = vunpack.i.h.bf16 %v1507_v29 }
  0x96   : > { %v404_v10 = vsel %vm403_vm8, %v1346_v52, %v1341_v53  ;;  %v405_v17 = vsel %vm403_vm8, %v1341_v53, %v1342_v59  ;;  %v406_v24 = vsel %vm403_vm8, %v1342_v59, %v1347_v0  ;;  %v1380_v59 = vld [vmem:[%s1681_s2] sm:$0xff]  }
  0x97   : > { %v1355_v40 = vpop.permute.xlu1 %1354  ;;  %v1350_v41 = vpop.permute.xlu0 %1349  ;;  %v483_v25 = vsel %vm482_vm7, %v479_v9, %v404_v10  ;;  %v484_v28 = vsel %vm482_vm7, %v480_v16, %v405_v17  ;;  %v485_v38 = vsel %vm482_vm7, %v481_v20, %v406_v24 }
  0x98   : > { %v1356_v61 = vunpack.i.l.bf16 %v1355_v40  ;;  %v1352_v62 = vunpack.i.h.bf16 %v1350_v41  ;;  %v1351_v63 = vunpack.i.l.bf16 %v1350_v41  ;;  %v1357_v11 = vunpack.i.h.bf16 %v1355_v40 }
  0x9a   : > { %v419_v21 = vsel %vm418_vm9, %v1356_v61, %v1351_v63  ;;  %v420_v22 = vsel %vm418_vm9, %v1351_v63, %v1352_v62  ;;  %v421_v29 = vsel %vm418_vm9, %v1352_v62, %v1357_v11  ;;  %v1381_v61 = vld [vmem:[%s1681_s2 + $0x8] sm:$0xff]  }
  0x9b   : > { %v1365_v54 = vpop.permute.xlu1 %1364  ;;  %v1360_v55 = vpop.permute.xlu0 %1359  ;;  %v488_v36 = vsel %vm486_vm11, %v484_v28, %v420_v22  ;;  %v487_v37 = vsel %vm486_vm11, %v483_v25, %v419_v21  ;;  %v489_v48 = vsel %vm486_vm11, %v485_v38, %v421_v29 }
  0x9c   : > { %v1366_v5 = vunpack.i.l.bf16 %v1365_v54  ;;  %v1362_v6 = vunpack.i.h.bf16 %v1360_v55  ;;  %v1361_v7 = vunpack.i.l.bf16 %v1360_v55  ;;  %v1367_v23 = vunpack.i.h.bf16 %v1365_v54 }
  0x9e   : > { %v434_v26 = vsel %vm433_vm10, %v1366_v5, %v1361_v7  ;;  %v435_v27 = vsel %vm433_vm10, %v1361_v7, %v1362_v6  ;;  %v436_v39 = vsel %vm433_vm10, %v1362_v6, %v1367_v23 }
  0x9f   : > { %v441_v12 = vpop.permute.xlu1 %440  ;;  %v1370_v15 = vpop.permute.xlu0 %1369  ;;  %v492_v40 = vsel %vm490_vm13, %v488_v36, %v435_v27  ;;  %v491_v41 = vsel %vm490_vm13, %v487_v37, %v434_v26  ;;  %v493_v54 = vsel %vm490_vm13, %v489_v48, %v436_v39  ;;  %v510_v37 = vld [vmem:[%s1682_s3 + $0x18] sm:$0xff]  ;;  %v509_v48 = vld [vmem:[%s1682_s3 + $0x10] sm:$0xff] }
  0xa0   : > { %v1372_v18 = vunpack.i.h.bf16 %v1370_v15  ;;  %v1371_v19 = vunpack.i.l.bf16 %v1370_v15 }
  0xa2   : > { %v449_v32 = vsel %vm448_vm12, %v441_v12, %v1371_v19  ;;  %v450_v33 = vsel %vm448_vm12, %v1371_v19, %v1372_v18 }
  0xa3   : > { %v456_v30 = vpop.permute.xlu1 %455  ;;  %v1375_v31 = vpop.permute.xlu0 %1374  ;;  %v496_v43 = vsel %vm494_vm15, %v492_v40, %v450_v33  ;;  %v495_v45 = vsel %vm494_vm15, %v491_v41, %v449_v32 }
  0xa4   : > { %v1377_v34 = vunpack.i.h.bf16 %v1375_v31  ;;  %v1376_v35 = vunpack.i.l.bf16 %v1375_v31 }
  0xa6   : > { %v465_v42 = vsel %vm463_vm14, %v1376_v35, %v1377_v34  ;;  %v464_v44 = vsel %vm463_vm14, %v456_v30, %v1376_v35 }
  0xa7   : > { %v462_v46 = vpop.permute.xlu1 %461  ;;  %v447_v47 = vpop.permute.xlu0 %446  ;;  %v505_v50 = vpack.c.bf16 %v465_v42, %v496_v43  ;;  %v504_v51 = vpack.c.bf16 %v464_v44, %v495_v45  ;;  %v1407_v43 = vmov 0.0|0.0   ;;  %v511_v45 = vld [vmem:[%s1682_s3 + $0x20] sm:$0xff] }
  0xa8   : > { %v466_v52 = vsel %vm463_vm14, %v1377_v34, %v462_v46  ;;  %v451_v53 = vsel %vm448_vm12, %v1372_v18, %v447_v47 }
  0xa9   : > { %v497_v55 = vsel %vm494_vm15, %v493_v54, %v451_v53  ;;  %v574_v56 = vand.u32 %v1523_v49, %v505_v50  ;;  %v571_v57 = vand.u32 %v1523_v49, %v504_v51 }
  0xaa   : > { %v506_v58 = vpack.c.bf16 %v466_v52, %v497_v55  ;;  %v512_v52 = vld [vmem:[%s1682_s3 + $0x28] sm:$0xff] }
  0xab   : > { %579 = vmatprep.subr.bf16.mxu0 %v574_v56 }
  0xac   : > { %580 = vmatpush1.bf16.msra.mxu0 %v571_v57  ;;  %v577_v60 = vand.u32 %v1523_v49, %v506_v58  ;;  %v1382_v49 = vld [vmem:[%s1681_s2 + $0x10] sm:$0xff]  }
  0xad   : > { %1260 = vmatprep.subr.mxu0 %v1402_v13 }
  0xae   : > { %1232 = vmatpush3.bf16.msra.mxu1 %v577_v60 }
  0xaf   : > { %1195 = vmatmul.mubr.msk.bf16.vlgmr.msra.gmra.mrb[0].mxu0 %vm558_vm1, %v1380_v59  ;;  %1276 = vmatprep.subr.bf16.mxu1 %v1407_v43 }
  0xb0   : > { %621 = vmatprep.mubr.bf16.mxu0 %v1403_v14 }
  0xb1   : > { %1234 = vmatmul.mubr.msk.bf16.vlgmr.msra.gmra.mrb[0].mxu1 %vm558_vm1, %v1380_v59 }
  0xb2   : > { %1237 = vmatprep.mubr.msk.bf16.mxu1 %vm1404_vm0, %v1402_v13 }
  0xb7   : > { %1196 = vmatmul.mubr.msk.bf16.gmra.mrb[4].mxu0 %vm558_vm1, %v1381_v61 }
  0xb8   : > { %631 = vmatprep.mubr.bf16.mxu0 %v1403_v14  ;;  %v516_v62 = vpop.permute.xlu0 %515  ;;  %v717_v14 = vld [vmem:[%s1680_s1] sm:$0x7]  ;;  %v521_v0 = vpop.permute.xlu1 %520 }
  0xb9   : > { %1238 = vmatmul.mubr.msk.bf16.gmra.mrb[4].mxu1 %vm558_vm1, %v1381_v61  ;;  %v1595_v6 = vrot.slane %v717_v14, %v333_v4  ;;  %v1599_v9 = vrot.slane %v717_v14, %v337_v2  ;;  %v1603_v17 = vrot.slane %v717_v14, %v341_v3  ;;  %v776_v14 = vld [vmem:[%s1683_s4] sm:$0xf] }
  0xba   : > { %1241 = vmatprep.mubr.msk.bf16.mxu1 %vm1404_vm0, %v1402_v13 }
  0xbf   : > { %1197 = vmatmul.mubr.msk.bf16.gmra.mrb[8].mxu0 %vm558_vm1, %v1382_v49 }
  0xc0   : > { %1262 = vmatprep.mubr.msk.f32.mxu0 %vm1404_vm0, %v1402_v13 }
  0xc1   : > { %1242 = vmatmul.mubr.msk.bf16.gmra.mrb[8].mxu1 %vm558_vm1, %v1382_v49 }
  0xc2   : > { %1249 = vmatprep.mubr.msk.f32.mxu1 %vm1404_vm0, %v1402_v13 }
 0x182   : > { %v613_v63 = vpop.f32.mrb[0].mxu0 }
 0x183   : > { %v614_v5 = vadd.f32 %v613_v63, %v516_v62  ;;  %v615_v7 = vpop.f32.mrb[1].mxu0 }
 0x184   : > { %v616_v8 = vadd.f32 %v615_v7, %v516_v62  ;;  %v617_v10 = vpop.f32.mrb[2].mxu0  ;;  %v676_v11 = vpop.f32.mrb[0].mxu1 }
 0x185   : > { %v699_v12 = vmax.f32 %v614_v5, 0.0  ;;  %v618_v15 = vadd.f32 %v617_v10, %v521_v0  ;;  %v677_v16 = vadd.f32 %v676_v11, %v516_v62  ;;  %v619_v18 = vpop.f32.mrb[3].mxu0  ;;  %v1235_v19 = vpop.f32.mrb[1].mxu1 }
 0x186   : > { %v700_v20 = vmax.f32 %v616_v8, 0.0  ;;  %v620_v4 = vadd.f32 %v619_v18, %v521_v0  ;;  %v679_v21 = vpop.f32.mrb[2].mxu1 }
 0x187   : > { %v734_v22 = vmul.f32 %v1595_v6, %v699_v12  ;;  %v702_v23 = vmax.f32 %v618_v15, 0.0  ;;  %v701_v24 = vmax.f32 %v677_v16, 0.0  ;;  %v680_v2 = vadd.f32 %v679_v21, %v521_v0  ;;  %v1236_v25 = vpop.f32.mrb[3].mxu1 }
 0x188   : > { %v735_v26 = vmul.f32 %v1599_v9, %v700_v20  ;;  %v703_v27 = vmax.f32 %v620_v4, 0.0 }
 0x189   : > { %v737_v28 = vmul.f32 %v1595_v6, %v702_v23  ;;  %v736_v1 = vmul.f32 %v1603_v17, %v701_v24  ;;  %v704_v3 = vmax.f32 %v680_v2, 0.0 }
 0x18a   : > { %v738_v29 = vmul.f32 %v1599_v9, %v703_v27  ;;  %v752_v30 = vadd.f32 %v735_v26, %v734_v22  ;;  %v623_v35 = vpop.f32.mrb[4].mxu0 }
 0x18b   : > { %v739_v31 = vmul.f32 %v1603_v17, %v704_v3  ;;  %v625_v38 = vpop.f32.mrb[5].mxu0 }
 0x18c   : > { %v753_v32 = vadd.f32 %v752_v30, %v736_v1  ;;  %v756_v33 = vadd.f32 %v738_v29, %v737_v28  ;;  %v684_v36 = vpop.f32.mrb[4].mxu1  ;;  %v627_v40 = vpop.f32.mrb[6].mxu0 }
 0x18d   : > { %v1239_v39 = vpop.f32.mrb[5].mxu1  ;;  %v629_v42 = vpop.f32.mrb[7].mxu0 }
 0x18e   : > { %754 = vadd.xlane.f32.xlu1 %v753_v32  ;;  %v757_v34 = vadd.f32 %v756_v33, %v739_v31  ;;  %v687_v41 = vpop.f32.mrb[6].mxu1 }
 0x18f   : > { %v1240_v44 = vpop.f32.mrb[7].mxu1 }
 0x190   : > { %758 = vadd.xlane.f32.xlu0 %v757_v34 }
 0x192   : > { %v633_v46 = vpop.f32.mrb[8].mxu0 }
 0x193   : > { %v635_v50 = vpop.f32.mrb[9].mxu0 }
 0x194   : > { %v692_v47 = vpop.f32.mrb[8].mxu1  ;;  %v637_v53 = vpop.f32.mrb[10].mxu0 }
 0x195   : > { %v1243_v51 = vpop.f32.mrb[9].mxu1  ;;  %v639_v55 = vpop.f32.mrb[11].mxu0 }
 0x196   : > { %v695_v54 = vpop.f32.mrb[10].mxu1 }
 0x197   : > { %v1244_v56 = vpop.f32.mrb[11].mxu1 }
 0x19f   : > { %530 = vperm.xlu1 %1379, %v510_v37  }
 0x1a3   : > { %535 = vperm.xlu1 %1379, %v511_v45  }
 0x1a6   : > { %525 = vperm.xlu0 %1378, %v509_v48  }
 0x1aa   : > { %540 = vperm.xlu0 %1378, %v512_v52  }
 0x21b   : > { %v755_v57 = vpop.xlane.xlu1 %754 }
 0x21d   : > { %v759_v58 = vpop.xlane.xlu0 %758 }
 0x21e   : > { %v1277_v59 = vpack.c.bf16 %v759_v58, %v755_v57 }
 0x21f   : > { %v531_v60 = vpop.permute.xlu1 %530 }
 0x220   : > { %v628_v61 = vadd.f32 %v627_v40, %v531_v60  ;;  %v630_v49 = vadd.f32 %v629_v42, %v531_v60  ;;  %v688_v62 = vadd.f32 %v687_v41, %v531_v60  ;;  %1278 = vmatpush3.bf16.msra.mxu1 %v1277_v59 }
 0x222   : > { %v708_v63 = vmax.f32 %v628_v61, 0.0  ;;  %v709_v0 = vmax.f32 %v630_v49, 0.0  ;;  %v710_v5 = vmax.f32 %v688_v62, 0.0 }
 0x223   : > { %1250 = vmatmul.mubr.msk.f32.vlgmr.msra.gmra.mrb[12].mxu1 %vm778_vm2, %v776_v14  ;;  %v536_v7 = vpop.permute.xlu1 %535 }
 0x224   : > { %v634_v8 = vadd.f32 %v633_v46, %v536_v7  ;;  %v636_v10 = vadd.f32 %v635_v50, %v536_v7  ;;  %v693_v11 = vadd.f32 %v692_v47, %v536_v7  ;;  %v743_v12 = vmul.f32 %v1595_v6, %v708_v63  ;;  %v872_v50 = vld [vmem:[%s1685_s6] sm:$0xff] }
 0x225   : > { %v526_v15 = vpop.permute.xlu0 %525  ;;  %v744_v16 = vmul.f32 %v1599_v9, %v709_v0  ;;  %v745_v23 = vmul.f32 %v1603_v17, %v710_v5  ;;  %1254 = vmatprep.mubr.msk.f32.mxu1 %vm876_vm3, %v872_v50 }
 0x226   : > { %v711_v18 = vmax.f32 %v634_v8, 0.0  ;;  %v712_v19 = vmax.f32 %v636_v10, 0.0  ;;  %v713_v20 = vmax.f32 %v693_v11, 0.0  ;;  %v624_v4 = vadd.f32 %v623_v35, %v526_v15  ;;  %v873_v11 = vld [vmem:[%s1685_s6 + $0x8] sm:$0xff] }
 0x227   : > { %v626_v21 = vadd.f32 %v625_v38, %v526_v15  ;;  %v685_v22 = vadd.f32 %v684_v36, %v526_v15  ;;  %v764_v24 = vadd.f32 %v744_v16, %v743_v12  ;;  %v874_v12 = vld [vmem:[%s1685_s6 + $0x10] sm:$0xff]  ;;  %v875_v15 = vld [vmem:[%s1685_s6 + $0x18] sm:$0xff]  ;;  %v982_v16 = vld [vmem:[%s1687_s8] sm:$0x3] }
 0x228   : > { %v705_v2 = vmax.f32 %v624_v4, 0.0  ;;  %v746_v25 = vmul.f32 %v1595_v6, %v711_v18  ;;  %v747_v26 = vmul.f32 %v1599_v9, %v712_v19  ;;  %v748_v29 = vmul.f32 %v1603_v17, %v713_v20 }
 0x229   : > { %v706_v27 = vmax.f32 %v626_v21, 0.0  ;;  %v707_v28 = vmax.f32 %v685_v22, 0.0  ;;  %v541_v1 = vpop.permute.xlu0 %540  ;;  %v765_v3 = vadd.f32 %v764_v24, %v745_v23 }
 0x22a   : > { %v638_v30 = vadd.f32 %v637_v53, %v541_v1  ;;  %v640_v31 = vadd.f32 %v639_v55, %v541_v1  ;;  %v696_v32 = vadd.f32 %v695_v54, %v541_v1  ;;  %v768_v33 = vadd.f32 %v747_v26, %v746_v25 }
 0x22b   : > { %766 = vadd.xlane.f32.xlu0 %v765_v3  ;;  %v740_v34 = vmul.f32 %v1595_v6, %v705_v2  ;;  %v741_v35 = vmul.f32 %v1599_v9, %v706_v27  ;;  %v742_v40 = vmul.f32 %v1603_v17, %v707_v28 }
 0x22c   : > { %v714_v36 = vmax.f32 %v638_v30, 0.0  ;;  %v715_v37 = vmax.f32 %v640_v31, 0.0  ;;  %v716_v38 = vmax.f32 %v696_v32, 0.0  ;;  %v769_v39 = vadd.f32 %v768_v33, %v748_v29 }
 0x22d   : > { %v760_v41 = vadd.f32 %v741_v35, %v740_v34 }
 0x22e   : > { %v749_v42 = vmul.f32 %v1595_v6, %v714_v36  ;;  %v750_v44 = vmul.f32 %v1599_v9, %v715_v37  ;;  %v751_v46 = vmul.f32 %v1603_v17, %v716_v38  ;;  %v777_v6 = vld [vmem:[%s1684_s5] sm:$0xf] }
 0x22f   : > { %770 = vadd.xlane.f32.xlu0 %v769_v39  ;;  %v761_v45 = vadd.f32 %v760_v41, %v742_v40 }
 0x230   : > { %v772_v47 = vadd.f32 %v750_v44, %v749_v42 }
 0x231   : > { %762 = vadd.xlane.f32.xlu1 %v761_v45 }
 0x232   : > { %v773_v48 = vadd.f32 %v772_v47, %v751_v46 }
 0x235   : > { %774 = vadd.xlane.f32.xlu1 %v773_v48 }
 0x2b8   : > { %v767_v19 = vpop.xlane.xlu0 %766 }
 0x2bc   : > { %v771_v25 = vpop.xlane.xlu0 %770 }
 0x2be   : > { %v763_v18 = vpop.xlane.xlu1 %762 }
 0x2c2   : > { %v775_v23 = vpop.xlane.xlu1 %774 }
 0x2f6   : > { %v848_v9 = vpop.f32.mrb[12].mxu1 }
 0x2f7   : > { %v849_v51 = vadd.f32 %v848_v9, %v777_v6  ;;  %v1251_v52 = vpop.f32.mrb[13].mxu1 }
 0x2f9   : > { %v853_v17 = vsel %vm852_vm4, %v849_v51, -inf }
 0x2fa   : > { %v854_v53 = vrot.slane %v853_v17, 4 }
 0x2fc   : > { %v855_v54 = vmax.f32 %v853_v17, %v854_v53 }
 0x2fe   : > { %v856_v55 = vrot.slane %v855_v54, 2 }
 0x300   : > { %v857_v56 = vmax.f32 %v855_v54, %v856_v55 }
 0x302   : > { %v858_v57 = vrot.slane %v857_v56, 1 }
 0x304   : > { %v859_v58 = vmax.f32 %v857_v56, %v858_v57 }
 0x306   : > { %v860_v59 = vsub.f32 %v849_v51, %v859_v58 }
 0x308   : > { %v861_v60 = vmul.f32 1.442695, %v860_v59 }
 0x30a   : > { %1383 = vpow2.f32 %v861_v60 }
 0x314   : > { %v1384_v61 = vpop.eup %1383 }
 0x315   : > { %v863_v49 = vsel %vm852_vm4, %v1384_v61, 0.0 }
 0x316   : > { %v864_v62 = vrot.slane %v863_v49, 4 }
 0x318   : > { %v865_v14 = vadd.f32 %v864_v62, %v863_v49 }
 0x31a   : > { %v866_v63 = vrot.slane %v865_v14, 2 }
 0x31c   : > { %v867_v0 = vadd.f32 %v866_v63, %v865_v14 }
 0x31e   : > { %v868_v5 = vrot.slane %v867_v0, 1 }
 0x320   : > { %v869_v7 = vadd.f32 %v868_v5, %v867_v0 }
 0x322   : > { %1385 = vrcp.f32 %v869_v7 }
 0x32c   : > { %v1386_v8 = vpop.eup %1385 }
 0x32d   : > { %v871_v10 = vmul.f32 %v1386_v8, %v1384_v61 }
 0x32f   : > { %1252 = vmatprep.subr.msk.mxu1 %vm482_vm7, %v871_v10  ;;  %1261 = vmatpush3.msk.msra.mxu0 %vm482_vm7, %v871_v10 }
 0x330   : > { %1253 = vmatpush3.msk.msra.mxu1 %vm482_vm7, %v871_v10  ;;  %1279 = vmatprep.subr.bf16.mxu0 %v1407_v43 }
 0x331   : > { %1255 = vmatmul.mubr.msk.f32.vlgmr.msra.gmra.mrb[14].mxu1 %vm876_vm3, %v873_v11  ;;  %1263 = vmatmul.mubr.msk.f32.vlgmr.msra.gmra.mrb[12].mxu0 %vm876_vm3, %v982_v16 }
 0x332   : > { %1257 = vmatprep.mubr.msk.f32.mxu1 %vm876_vm3, %v874_v12  ;;  %1273 = vmatprep.mubr.msk.f32.mxu0 %vm1404_vm0, %v1402_v13  ;;  %v977_v13 = vld [vmem:[%s1686_s7] sm:$0x3]  ;;  %vm1056_vm0 = vcmask 261120  }
 0x335   : > { %1258 = vmatmul.mubr.msk.f32.gmra.mrb[16].mxu1 %vm876_vm3, %v875_v15 }
 0x404   : > { %v1256_v20 = vpop.f32.mrb[14].mxu1 }
 0x405   : > { %v979_v4 = vmul.f32 %v1256_v20, %v767_v19  ;;  %v958_v21 = vpop.f32.mrb[15].mxu1 }
 0x406   : > { %v978_v22 = vmul.f32 %v958_v21, %v763_v18 }
 0x408   : > { %v1280_v24 = vpack.c.bf16 %v979_v4, %v978_v22  ;;  %v1259_v2 = vpop.f32.mrb[16].mxu1 }
 0x409   : > { %v981_v26 = vmul.f32 %v1259_v2, %v775_v23  ;;  %v968_v27 = vpop.f32.mrb[17].mxu1 }
 0x40a   : > { %v980_v28 = vmul.f32 %v968_v27, %v771_v25  ;;  %1281 = vmatpush3.bf16.msra.mxu0 %v1280_v24 }
 0x40b   : > { %1282 = vmatprep.subr.bf16.mxu0 %v1407_v43 }
 0x40c   : > { %v1283_v1 = vpack.c.bf16 %v981_v26, %v980_v28 }
 0x40e   : > { %1284 = vmatpush3.bf16.msra.mxu0 %v1283_v1 }
 0x411   : > { %1274 = vmatmul.mubr.msk.f32.vlgmr.msra.gmra.mrb[12].mxu0 %vm1056_vm0, %v977_v13 }
 0x4e4   : > { %v1126_v3 = vpop.f32.mrb[12].mxu0 }
 0x4e5   : > { %1131 = vst.msk [vmem:[%s327_s24] sm:$0x3] %vm1130_vm5, %v1126_v3  ;;  %v1275_v29 = vpop.f32.mrb[13].mxu0 }
 0x4e6 PF: > { %s19_s30 = sadd.s32 1, %s1393_s30  }
 0x4e7   : > { %p16_p4 = scmp.ge.s32.totalorder %s19_s30, 4  }
 0x4e9   :  { %18 = sbr.rel (!%p16_p4) target bundleno = 1 (0x1), region = 86 }

</bundles_post_ra>
